<compile_context>
chip_gen: v7x
topology: tpu7x:2x2x1
jax: 0.10.0
libtpu: 0.0.40
codegen_flags: <defaults>
</compile_context>

<pallas_src>
import functools
import math

import jax
import jax.numpy as jnp
from jax.experimental import pallas as pl
from jax.experimental.pallas import tpu as pltpu


def _round_up(x, m):
    return ((x + m - 1) // m) * m


def _qkv_attention_kernel(q_ref, k_ref, v_ref, a_ref, wsum_ref, *,
                          scale2, use_gumbel_softmax):
    # Block shapes: q_ref (BH, ch); k_ref/v_ref (BH, ch, T);
    #               a_ref (ch, BH); wsum_ref (1, BH).
    q = q_ref[...]                                   # (BH, ch), input dtype
    k = k_ref[...]                                   # (BH, ch, T)
    v = v_ref[...]                                   # (BH, ch, T)

    # logits[b, t] = scale^2 * sum_c q[b, c] * k[b, c, t]
    # Product stays in the input dtype (bf16-native VPU on v6e/v7x); only the
    # small (BH, T) logits / softmax run in float32 (matches torch's .float()).
    qk = (q[:, :, None] * k).astype(jnp.float32)     # (BH, ch, T)
    logits = jnp.sum(qk, axis=1) * scale2            # (BH, T)

    # Softmax over T (lane axis), computed in float32.
    m = jnp.max(logits, axis=-1, keepdims=True)      # (BH, 1)
    e = jnp.exp(logits - m)                          # (BH, T)
    denom = jnp.sum(e, axis=-1, keepdims=True)       # (BH, 1)
    # approx=False keeps full f32 accuracy for the self-check; approx=True
    # would push this onto the otherwise-idle EUP slot at lower precision.
    recip = pl.reciprocal(denom, approx=False)       # (BH, 1)

    if use_gumbel_softmax:
        # Eval branch: hard one-hot at the row max.  Softmax is monotone, so
        # thresholding the f32 logits selects the same argmax as torch's
        # `weight == weight.max()`.  `a` is intentionally un-normalised
        # (torch uses the one-hot, not the softmax, in the second einsum).
        mask = logits >= m                                          # (BH, T)
        onehot = mask.astype(v.dtype)
        a = jnp.sum(v * onehot[:, None, :], axis=-1)                # (BH, ch)
        a_ref[...] = a.T.astype(a_ref.dtype)                        # (ch, BH)
        # sum_t softmax*onehot = (#maxima) * exp(0) * recip — skips the full
        # normalise and the weight*onehot passes over (BH, T).
        count = jnp.sum(mask.astype(jnp.float32), axis=-1, keepdims=True)
        wsum = count * recip                                        # (BH, 1)
    else:
        # Deferred normalisation: accumulate sum_t e*v, then scale the small
        # (BH, ch) result by the per-row reciprocal (lane broadcast, no
        # relayout) instead of normalising the whole (BH, T) weight.
        attn = e.astype(v.dtype)                                    # (BH, T)
        a_un = jnp.sum(v * attn[:, None, :], axis=-1)               # (BH, ch)
        a_ref[...] = (a_un * recip).T.astype(a_ref.dtype)           # (ch, BH)
        wsum = denom * recip                                        # ~1 / row

    # Lane-dense (1, BH) store; the (BH,1)->(1,BH) relayout is O(BH), tiny.
    wsum_ref[...] = jnp.transpose(wsum).astype(wsum_ref.dtype)


def _pick_bh_block(bh, ch, length, itemsize):
    """Largest (batch*head) block whose double-buffered k/v inputs fit budget."""
    lanes_t = _round_up(length, 128)
    sub_ch = _round_up(ch, 8)
    kv_row_bytes = 2 * sub_ch * lanes_t * itemsize   # one bh row of k + v in VMEM
    input_budget = 12 * 1024 * 1024                  # double-buffered k/v cap
    max_blk = max(128, (input_budget // (2 * kv_row_bytes)) // 128 * 128)
    if bh <= 128:
        return bh                                    # single full-extent block
    blk = min(max_blk, 1024)
    # Guarantee >= 2 grid steps so v7x's second TensorCore gets work.
    two_step = _round_up(-(-bh // 2), 128)
    return max(128, min(blk, two_step))


def _vmem_limit_bytes(bh_blk, ch, length, itemsize):
    """Scoped-VMEM limit derived from the actual block footprint (+ headroom)."""
    lanes_t = _round_up(length, 128)
    sub_ch = _round_up(ch, 8)
    kv_blk = bh_blk * sub_ch * lanes_t * itemsize            # one k or v block
    q_blk = _round_up(bh_blk, 8) * _round_up(ch, 128) * itemsize
    out_blk = (sub_ch + 8) * _round_up(bh_blk, 128) * itemsize
    scratch = 3 * bh_blk * sub_ch * lanes_t * 4              # f32 temporaries
    total = 2 * (2 * kv_blk + q_blk + out_blk) + scratch + (2 << 20)
    # Clamp to [32 MiB, 64 MiB]: safe on v5e/v6e (128 MiB) and v7x (64 MiB).
    return int(min(max(total, 32 << 20), 64 << 20))


def qkv_attention(q, k, v, n_heads, use_gumbel_softmax=False, is_train=False,
                  hard_mode=False, bh_block=None):
    """Pallas TPU forward matching QKVAttention.forward (softmax / gumbel-eval)."""
    bs, width, length = k.shape
    assert k.shape == v.shape
    assert q.shape == (bs, width, 1)
    assert width % n_heads == 0
    ch = width // n_heads
    bh = bs * n_heads
    scale2 = 1.0 / math.sqrt(ch)      # (1/ch**0.25)**2, folded once into logits

    if use_gumbel_softmax and is_train:
        # TODO(synk): gumbel-softmax *training* branch needs stochastic Gumbel
        # noise matching torch.nn.functional.gumbel_softmax's RNG stream.
        raise NotImplementedError("gumbel-softmax training branch not implemented")
    del hard_mode  # only used by the (unimplemented) training branch

    itemsize = jnp.dtype(q.dtype).itemsize
    if bh_block is None:
        bh_block = _pick_bh_block(bh, ch, length, itemsize)
    else:
        assert bh_block == bh or bh_block % 128 == 0

    # No wrapper-side padding: non-divisible grid lets Pallas mask the edge
    # block; out-of-bounds rows are independent and never written back.
    grid = (pl.cdiv(bh, bh_block),)

    qh = q.reshape(bh, ch)            # drop trailing singleton (lane-dense q)
    kh = k.reshape(bh, ch, length)
    vh = v.reshape(bh, ch, length)

    kernel = functools.partial(_qkv_attention_kernel, scale2=scale2,
                               use_gumbel_softmax=use_gumbel_softmax)

    # NOTE: for T < 128 the lane axis of k/v blocks is under-occupied; for tiny
    # problems the pure-XLA path (qkv_attention_ref) can beat a kernel launch.
    # TODO(synk): add T-tiling (online softmax) for ch*T blocks that do not fit
    # VMEM even at bh_block=128.
    a_t, wsum_t = pl.pallas_call(
        kernel,
        out_shape=(jax.ShapeDtypeStruct((ch, bh), q.dtype),
                   jax.ShapeDtypeStruct((1, bh), q.dtype)),
        grid_spec=pltpu.PrefetchScalarGridSpec(
            num_scalar_prefetch=0,
            grid=grid,
            in_specs=[pl.BlockSpec((bh_block, ch), lambda b: (b, 0)),
                      pl.BlockSpec((bh_block, ch, length), lambda b: (b, 0, 0)),
                      pl.BlockSpec((bh_block, ch, length), lambda b: (b, 0, 0))],
            out_specs=[pl.BlockSpec((ch, bh_block), lambda b: (0, b)),
                       pl.BlockSpec((1, bh_block), lambda b: (0, b))]),
        compiler_params=pltpu.CompilerParams(
            dimension_semantics=("parallel",),
            vmem_limit_bytes=_vmem_limit_bytes(bh_block, ch, length, itemsize)),
    )(qh, kh, vh)

    a = a_t.T.reshape(bs, width, 1)
    weight_sum = wsum_t.reshape(bh, 1, 1)
    if n_heads > 1:
        weight_sum = weight_sum.reshape(bs, n_heads, -1)
        weight_sum = jnp.sum(weight_sum, axis=1, keepdims=True)   # (bs, 1, 1)
    return a, weight_sum


def qkv_attention_ref(q, k, v, n_heads, use_gumbel_softmax=False):
    """Pure-JAX reference mirroring the PyTorch forward."""
    bs, width, length = k.shape
    ch = width // n_heads
    scale = 1.0 / math.sqrt(math.sqrt(ch))
    qh = (q * scale).reshape(bs * n_heads, ch, -1)
    kh = (k * scale).reshape(bs * n_heads, ch, -1)
    vh = v.reshape(bs * n_heads, ch, -1)
    weight = jnp.einsum('bct,bcs->bts', qh, kh)
    weight = jax.nn.softmax(weight.astype(jnp.float32), axis=-1).astype(weight.dtype)
    if use_gumbel_softmax:
        onehot = (weight == jnp.max(weight, axis=-1, keepdims=True)).astype(jnp.float32)
        weight = weight * onehot
        a = jnp.einsum('bts,bcs->bct', onehot, vh)
    else:
        a = jnp.einsum('bts,bcs->bct', weight, vh)
    wsum = jnp.sum(weight, axis=2, keepdims=True)
    if n_heads > 1:
        wsum = wsum.reshape(bs, n_heads, -1)
        wsum = jnp.sum(wsum, axis=1, keepdims=True)
    return a.reshape(bs, width, -1), wsum


if __name__ == "__main__":
    def _check(idx, bs, n_heads, ch, T, use_gumbel, tag):
        width = n_heads * ch
        key = jax.random.fold_in(jax.random.PRNGKey(0), idx)
        kq, kk, kv = jax.random.split(key, 3)
        q = jax.random.normal(kq, (bs, width, 1), dtype=jnp.float32)
        k = jax.random.normal(kk, (bs, width, T), dtype=jnp.float32)
        v = jax.random.normal(kv, (bs, width, T), dtype=jnp.float32)

        a, wsum = qkv_attention(q, k, v, n_heads, use_gumbel_softmax=use_gumbel)
        jax.block_until_ready((a, wsum))
        a_r, wsum_r = qkv_attention_ref(q, k, v, n_heads,
                                        use_gumbel_softmax=use_gumbel)
        assert a.shape == a_r.shape, (tag, a.shape, a_r.shape)
        assert wsum.shape == wsum_r.shape, (tag, wsum.shape, wsum_r.shape)
        assert jnp.allclose(a, a_r, atol=1e-4, rtol=1e-4), tag
        assert jnp.allclose(wsum, wsum_r, atol=1e-4, rtol=1e-4), tag

    # bh = 8 -> single full-extent block (no padding, no masking).
    _check(0, bs=2, n_heads=4, ch=8, T=16, use_gumbel=False, tag="softmax_small")
    _check(1, bs=2, n_heads=4, ch=8, T=16, use_gumbel=True, tag="gumbel_eval_small")
    # bh = 512 -> two 256-wide blocks (multi-step grid, >= 2 steps for v7x).
    _check(2, bs=64, n_heads=8, ch=8, T=16, use_gumbel=False, tag="softmax_2blocks")
    # bh = 160 -> grid of 2 with a masked edge block (no wrapper-side pad).
    _check(3, bs=20, n_heads=8, ch=8, T=16, use_gumbel=False, tag="softmax_edge_block")

    print("KERNEL_OK")
</pallas_src>

<mosaic_0001>
module attributes {stable_mosaic.version = 11 : i64} {
  func.func @_qkv_attention_kernel(%arg0: i32, %arg1: memref<8x8xf32, #tpu.memory_space<vmem>>, %arg2: memref<8x8x16xf32, #tpu.memory_space<vmem>>, %arg3: memref<8x8x16xf32, #tpu.memory_space<vmem>>, %arg4: memref<8x8xf32, #tpu.memory_space<vmem>>, %arg5: memref<1x8xf32, #tpu.memory_space<vmem>>) attributes {dimension_semantics = [#tpu.dimension_semantics<parallel>], iteration_bounds = array<i64: 1>, scalar_prefetch = 0 : i64, scratch_operands = 0 : i64, tpu.core_type = #tpu.core_type<tc>, window_params = [{transform_indices = @transform_0, window_bounds = array<i64: 8, 8>}, {transform_indices = @transform_1, window_bounds = array<i64: 8, 8, 16>}, {transform_indices = @transform_2, window_bounds = array<i64: 8, 8, 16>}, {transform_indices = @transform_3, window_bounds = array<i64: 8, 8>}, {transform_indices = @transform_4, window_bounds = array<i64: 1, 8>}]} {
    %c0 = arith.constant 0 : index
    %c0_0 = arith.constant 0 : index
    %0 = vector.load %arg1[%c0, %c0_0] : memref<8x8xf32, #tpu.memory_space<vmem>>, vector<8x8xf32>
    %c0_1 = arith.constant 0 : index
    %c0_2 = arith.constant 0 : index
    %c0_3 = arith.constant 0 : index
    %1 = vector.load %arg2[%c0_1, %c0_2, %c0_3] : memref<8x8x16xf32, #tpu.memory_space<vmem>>, vector<8x8x16xf32>
    %c0_4 = arith.constant 0 : index
    %c0_5 = arith.constant 0 : index
    %c0_6 = arith.constant 0 : index
    %2 = vector.load %arg3[%c0_4, %c0_5, %c0_6] : memref<8x8x16xf32, #tpu.memory_space<vmem>>, vector<8x8x16xf32>
    %3 = vector.shape_cast %0 : vector<8x8xf32> to vector<8x8x1xf32>
    %4 = vector.broadcast %3 : vector<8x8x1xf32> to vector<8x8x16xf32>
    %5 = arith.mulf %4, %1 : vector<8x8x16xf32>
    %cst = arith.constant dense<0.000000e+00> : vector<8x16xf32>
    %6 = vector.multi_reduction <add>, %5, %cst [1] : vector<8x8x16xf32> to vector<8x16xf32>
    %cst_7 = arith.constant 0.353553385 : f32
    %7 = vector.broadcast %cst_7 : f32 to vector<8x16xf32>
    %8 = arith.mulf %6, %7 : vector<8x16xf32>
    %cst_8 = arith.constant dense<0xFF800000> : vector<8xf32>
    %9 = vector.multi_reduction <maximumf>, %8, %cst_8 [1] : vector<8x16xf32> to vector<8xf32>
    %10 = vector.shape_cast %9 : vector<8xf32> to vector<8x1xf32>
    %11 = vector.broadcast %10 : vector<8x1xf32> to vector<8x16xf32>
    %12 = arith.subf %8, %11 : vector<8x16xf32>
    %13 = math.exp %12 : vector<8x16xf32>
    %cst_9 = arith.constant dense<0.000000e+00> : vector<8xf32>
    %14 = vector.multi_reduction <add>, %13, %cst_9 [1] : vector<8x16xf32> to vector<8xf32>
    %15 = vector.shape_cast %14 : vector<8xf32> to vector<8x1xf32>
    %16 = tpu.reciprocal %15 : vector<8x1xf32> -> vector<8x1xf32>
    %17 = vector.shape_cast %13 : vector<8x16xf32> to vector<8x1x16xf32>
    %18 = vector.broadcast %17 : vector<8x1x16xf32> to vector<8x8x16xf32>
    %19 = arith.mulf %2, %18 : vector<8x8x16xf32>
    %cst_10 = arith.constant dense<0.000000e+00> : vector<8x8xf32>
    %20 = vector.multi_reduction <add>, %19, %cst_10 [2] : vector<8x8x16xf32> to vector<8x8xf32>
    %21 = vector.broadcast %16 : vector<8x1xf32> to vector<8x8xf32>
    %22 = arith.mulf %20, %21 : vector<8x8xf32>
    %23 = tpu.transpose %22, [1, 0] : vector<8x8xf32> -> vector<8x8xf32>
    %c0_11 = arith.constant 0 : index
    %c0_12 = arith.constant 0 : index
    %24 = vector.load %arg4[%c0_11, %c0_12] : memref<8x8xf32, #tpu.memory_space<vmem>>, vector<8x8xf32>
    tpu.vector_store %arg4[%c0_11, %c0_12], %23 {strides = array<i32>} : memref<8x8xf32, #tpu.memory_space<vmem>>, vector<8x8xf32>,
    %25 = arith.mulf %15, %16 : vector<8x1xf32>
    %26 = tpu.transpose %25, [1, 0] : vector<8x1xf32> -> vector<1x8xf32>
    %c0_13 = arith.constant 0 : index
    %c0_14 = arith.constant 0 : index
    %27 = vector.load %arg5[%c0_13, %c0_14] : memref<1x8xf32, #tpu.memory_space<vmem>>, vector<1x8xf32>
    tpu.vector_store %arg5[%c0_13, %c0_14], %26 {strides = array<i32>} : memref<1x8xf32, #tpu.memory_space<vmem>>, vector<1x8xf32>,
    return
  }
  func.func @transform_0(%arg0: i32) -> (i32, i32) {
    %c0_i32 = arith.constant 0 : i32
    %c0_i32_0 = arith.constant 0 : i32
    return %arg0, %c0_i32 : i32, i32
  }
  func.func @transform_1(%arg0: i32) -> (i32, i32, i32) {
    %c0_i32 = arith.constant 0 : i32
    %c0_i32_0 = arith.constant 0 : i32
    %c0_i32_1 = arith.constant 0 : i32
    return %arg0, %c0_i32, %c0_i32_0 : i32, i32, i32
  }
  func.func @transform_2(%arg0: i32) -> (i32, i32, i32) {
    %c0_i32 = arith.constant 0 : i32
    %c0_i32_0 = arith.constant 0 : i32
    %c0_i32_1 = arith.constant 0 : i32
    return %arg0, %c0_i32, %c0_i32_0 : i32, i32, i32
  }
  func.func @transform_3(%arg0: i32) -> (i32, i32) {
    %c0_i32 = arith.constant 0 : i32
    %c0_i32_0 = arith.constant 0 : i32
    return %c0_i32, %arg0 : i32, i32
  }
  func.func @transform_4(%arg0: i32) -> (i32, i32) {
    %c0_i32 = arith.constant 0 : i32
    %c0_i32_0 = arith.constant 0 : i32
    return %c0_i32, %arg0 : i32, i32
  }
}

</mosaic_0001>

<bundles_post_ra>
// kernel: tpu_custom_call.1
= control target key start
LH: loop header
LB: loop body
LE: loop exit
PB: predicated region body
PF: predicated region fallthrough
CT: control target
= control target key end

     0   :  { %10 = vsyncpa [#allocation3], 0  ;;  %s920_s0 = inlined_call_operand.hbm [shape: f32[8,8], index: 0, kind: input, shape index: {}]   ;;  %s921_s1 = inlined_call_operand.hbm [shape: f32[8,8,16], index: 1, kind: input, shape index: {}]   ;;  %s922_s2 = inlined_call_operand.hbm [shape: f32[8,8,16], index: 2, kind: input, shape index: {}]   ;;  %s923_s3 = inlined_call_operand.hbm [shape: f32[8,8], index: 3, kind: output, shape index: {0}]   ;;  %s924_s4 = inlined_call_operand.hbm [shape: f32[1,8], index: 4, kind: output, shape index: {1}]  }
   0x1   :  { %11 = vsyncpa [#allocation6], 0 }
   0x2   :  { %12 = vsyncpa [#allocation4], 0 }
   0x3   :  { %13 = vsyncpa [#allocation10], 0  ;;  %s729_s15 = smov [#allocation5]   ;;  %s611_s19 = scalar_lea.hbm %s921_s1, 1024 }
   0x4   :  { %s29_s16 = sshll.u32 %s729_s15, 4  ;;  %p612_p0 = scmp.ne.s32.totalorder %s921_s1, %s611_s19  ;;  %s30_s16 = int_to_ptr.vmem [resolvable:$true] %s29_s16 }
   0x5   :  { %p615_p1 = scmp.lt.u32.totalorder %s611_s19, %s921_s1 }
   0x7   :  { %p617_p2 = pnand %p615_p1, %p612_p0 }
   0x9   :  { %620 = shalt.err (!%p617_p2)
}
   0xa   :  { %s621_s24 = scalar_lea.vmem %s30_s16, 1024  ;;  %p626_p4 = scmp.lt.s32.totalorder %s30_s16, %s30_s16 }
   0xb   :  { %p622_p3 = scmp.ne.s32.totalorder %s30_s16, %s621_s24  ;;  %p627_p5 = scmp.lt.s32.totalorder %s621_s24, %s621_s24 }
   0xd   :  { %p628_p6 = por %p627_p5, %p626_p4 }
   0xf   :  { %p629_p7 = pnand %p628_p6, %p622_p3 }
  0x11   :  { %632 = shalt.err (!%p629_p7)
}
  0x12   :  { %s730_s25 = smov 128   ;;  %s731_s26 = smov 8  }
  0x13   :  { %35 = dma.hbm_to_vmem [thread:$0]  %s921_s1, 1024, %s30_s16, [#allocation6], %s730_s25, %s730_s25, %s731_s26  }
  0x14   :  { %s732_s29 = smov [#allocation2]   ;;  %s733_s5 = smov [#allocation7]  }
  0x15   :  { %s20_s30 = sshll.u32 %s732_s29, 4  ;;  %s41_s6 = sshll.u32 %s733_s5, 4  ;;  %s21_s30 = int_to_ptr.vmem [resolvable:$true] %s20_s30  ;;  %s42_s6 = int_to_ptr.vmem [resolvable:$true] %s41_s6 }
  0x16   :  { %s633_s9 = scalar_lea.hbm %s920_s0, 128 }
  0x17   :  { %p634_p8 = scmp.ne.s32.totalorder %s920_s0, %s633_s9  ;;  %p637_p9 = scmp.lt.u32.totalorder %s633_s9, %s920_s0 }
  0x19   :  { %p639_p10 = pnand %p637_p9, %p634_p8 }
  0x1b   :  { %642 = shalt.err (!%p639_p10)
}
  0x1c   :  { %s643_s1 = scalar_lea.vmem %s21_s30, 128  ;;  %p648_p12 = scmp.lt.s32.totalorder %s21_s30, %s21_s30 }
  0x1d   :  { %p644_p11 = scmp.ne.s32.totalorder %s21_s30, %s643_s1  ;;  %p649_p13 = scmp.lt.s32.totalorder %s643_s1, %s643_s1 }
  0x1f   :  { %p650_p0 = por %p649_p13, %p648_p12 }
  0x21   :  { %p651_p1 = pnand %p650_p0, %p644_p11 }
  0x23   :  { %654 = shalt.err (!%p651_p1)
}
  0x24   :  { %23 = dma.hbm_to_vmem [thread:$0]  %s920_s0, 128, %s21_s30, [#allocation3]  }
  0x25   :  { %s655_s18 = scalar_lea.hbm %s922_s2, 1024 }
  0x26   :  { %p656_p2 = scmp.ne.s32.totalorder %s922_s2, %s655_s18  ;;  %p659_p3 = scmp.lt.u32.totalorder %s655_s18, %s922_s2 }
  0x28   :  { %p661_p4 = pnand %p659_p3, %p656_p2 }
  0x2a   :  { %664 = shalt.err (!%p661_p4)
}
  0x2b   :  { %s665_s23 = scalar_lea.vmem %s42_s6, 1024  ;;  %p670_p6 = scmp.lt.s32.totalorder %s42_s6, %s42_s6 }
  0x2c   :  { %p666_p5 = scmp.ne.s32.totalorder %s42_s6, %s665_s23  ;;  %p671_p7 = scmp.lt.s32.totalorder %s665_s23, %s665_s23 }
  0x2e   :  { %p672_p8 = por %p671_p7, %p670_p6 }
  0x30   :  { %p673_p9 = pnand %p672_p8, %p666_p5 }
  0x32   :  { %676 = shalt.err (!%p673_p9)
}
  0x33   :  { %47 = dma.hbm_to_vmem [thread:$0]  %s922_s2, 1024, %s42_s6, [#allocation6], %s730_s25, %s730_s25, %s731_s26  }
  0x34   :  { %721 = dma.done.wait [#allocation3], 128  }
  0x35   :  { %722 = vsyncadd [#allocation3], 4294967168 }
  0x36   :  { %723 = dma.done.wait [#allocation6], 2048  }
  0x37   :  { %724 = vsyncadd [#allocation6], 4294965248  ;;  %v74_v0 = vlaneseq  ;;  %v57_v6 = vld [vmem:[#allocation2] sm:$0xff]  ;;  %v60_v19 = vld [vmem:[#allocation5 + $0x10] sm:$0xff]  ;;  %vm138_vm0 = vcmask 130048   ;;  %vm211_vm1 = vcmask 1041409  }
  0x38   :  { %v58_v20 = vld [vmem:[#allocation5] sm:$0xff]  ;;  %v61_v25 = vld [vmem:[#allocation5 + $0x18] sm:$0xff]  ;;  %v59_v26 = vld [vmem:[#allocation5 + $0x8] sm:$0xff]  ;;  %vm213_vm2 = vcmask 1042434   ;;  %vm215_vm3 = vcmask 1043459   ;;  %vm217_vm4 = vcmask 1044484  }
  0x39   :  { %v805_v1 = vshrl.u32 %v74_v0, 7  ;;  %v63_v37 = vld [vmem:[#allocation5 + $0x28] sm:$0xff]  ;;  %v62_v38 = vld [vmem:[#allocation5 + $0x20] sm:$0xff]  ;;  %v65_v53 = vld [vmem:[#allocation5 + $0x38] sm:$0xff]  ;;  %vm219_vm5 = vcmask 1045509   ;;  %vm221_vm6 = vcmask 1046534  }
  0x3a   :  { %v64_v54 = vld [vmem:[#allocation5 + $0x30] sm:$0xff]  ;;  %vm223_vm7 = vcmask 1047559   ;;  %vm550_vm8 = vcmask 57344   ;;  %s735_s2 = smov [#allocation9]  }
  0x3b   :  { %v90_v2 = vsub.s32 2, %v805_v1  ;;  %v809_v3 = vsub.s32 0, %v805_v1  ;;  %v97_v4 = vsub.s32 3, %v805_v1  ;;  %v83_v5 = vsub.s32 1, %v805_v1  ;;  %s568_s25 = sshll.u32 %s735_s2, 4  ;;  %s569_s25 = int_to_ptr.vmem [resolvable:$true] %s568_s25 }
  0x3c   :  { %v111_v11 = vsub.s32 5, %v805_v1  ;;  %v104_v12 = vsub.s32 4, %v805_v1  ;;  %v125_v15 = vsub.s32 7, %v805_v1  ;;  %v118_v16 = vsub.s32 6, %v805_v1  ;;  %s677_s26 = scalar_lea.vmem %s569_s25, 16  ;;  %s681_s27 = scalar_lea.vmem %s569_s25, 32 }
  0x3d   :  { %v91_v7 = vrot.slane %v57_v6, %v90_v2  ;;  %v77_v8 = vrot.slane %v57_v6, %v809_v3  ;;  %v98_v9 = vrot.slane %v57_v6, %v97_v4  ;;  %v84_v10 = vrot.slane %v57_v6, %v83_v5  ;;  %p678_p10 = scmp.ne.s32.totalorder %s569_s25, %s677_s26  ;;  %p682_p11 = scmp.lt.s32.totalorder %s569_s25, %s569_s25 }
  0x3e   :  { %v112_v13 = vrot.slane %v57_v6, %v111_v11  ;;  %v105_v14 = vrot.slane %v57_v6, %v104_v12  ;;  %v126_v17 = vrot.slane %v57_v6, %v125_v15  ;;  %v119_v18 = vrot.slane %v57_v6, %v118_v16  ;;  %p683_p12 = scmp.lt.s32.totalorder %s681_s27, %s677_s26 }
  0x3f   :  { %93 = vbcast.lane.b32.xlu1 %v91_v7, 256  ;;  %79 = vbcast.lane.b32.xlu0 %v77_v8, 256 }
  0x40   :  { %p684_p13 = por %p683_p12, %p682_p11 }
  0x42   :  { %p685_p0 = pnand %p684_p13, %p678_p10 }
  0x43   :  { %100 = vbcast.lane.b32.xlu1 %v98_v9, 256  ;;  %86 = vbcast.lane.b32.xlu0 %v84_v10, 256 }
  0x47   :  { %114 = vbcast.lane.b32.xlu1 %v112_v13, 256  ;;  %107 = vbcast.lane.b32.xlu0 %v105_v14, 256 }
  0x4b   :  { %128 = vbcast.lane.b32.xlu1 %v126_v17, 256  ;;  %121 = vbcast.lane.b32.xlu0 %v119_v18, 256 }
  0xb1   :  { %v94_v21 = vpop.permute.xlu1 %93  ;;  %v80_v22 = vpop.permute.xlu0 %79 }
  0xb2   :  { %v132_v23 = vmul.f32 %v94_v21, %v60_v19  ;;  %v130_v24 = vmul.f32 %v80_v22, %v58_v20 }
  0xb4   :  { %v153_v27 = vsel %vm138_vm0, %v132_v23, 0.0  ;;  %v139_v28 = vsel %vm138_vm0, %v130_v24, 0.0 }
  0xb5   :  { %v154_v29 = vrot.slane %v153_v27, 4  ;;  %v140_v30 = vrot.slane %v139_v28, 4  ;;  %v101_v31 = vpop.permute.xlu1 %100  ;;  %v87_v32 = vpop.permute.xlu0 %86 }
  0xb6   :  { %v133_v33 = vmul.f32 %v101_v31, %v61_v25  ;;  %v131_v34 = vmul.f32 %v87_v32, %v59_v26 }
  0xb7   :  { %v155_v35 = vadd.f32 %v154_v29, %v153_v27  ;;  %v141_v36 = vadd.f32 %v140_v30, %v139_v28 }
  0xb8   :  { %v160_v39 = vsel %vm138_vm0, %v133_v33, 0.0  ;;  %v146_v40 = vsel %vm138_vm0, %v131_v34, 0.0 }
  0xb9   :  { %v156_v41 = vrot.slane %v155_v35, 2  ;;  %v142_v42 = vrot.slane %v141_v36, 2  ;;  %v161_v43 = vrot.slane %v160_v39, 4  ;;  %v147_v44 = vrot.slane %v146_v40, 4  ;;  %v115_v45 = vpop.permute.xlu1 %114  ;;  %v108_v46 = vpop.permute.xlu0 %107 }
  0xba   :  { %v135_v47 = vmul.f32 %v115_v45, %v63_v37  ;;  %v134_v48 = vmul.f32 %v108_v46, %v62_v38 }
  0xbb   :  { %v157_v49 = vadd.f32 %v156_v41, %v155_v35  ;;  %v143_v50 = vadd.f32 %v142_v42, %v141_v36  ;;  %v162_v51 = vadd.f32 %v161_v43, %v160_v39  ;;  %v148_v52 = vadd.f32 %v147_v44, %v146_v40 }
  0xbc   :  { %v174_v55 = vsel %vm138_vm0, %v135_v47, 0.0  ;;  %v167_v56 = vsel %vm138_vm0, %v134_v48, 0.0 }
  0xbd   :  { %v144_v57 = vrot.slane %v143_v50, 1  ;;  %v163_v58 = vrot.slane %v162_v51, 2  ;;  %v149_v59 = vrot.slane %v148_v52, 2  ;;  %v129_v60 = vpop.permute.xlu1 %128  ;;  %v122_v61 = vpop.permute.xlu0 %121  ;;  %v175_v62 = vrot.slane %v174_v55, 4 }
  0xbe   :  { %v168_v63 = vrot.slane %v167_v56, 4  ;;  %v137_v6 = vmul.f32 %v129_v60, %v65_v53  ;;  %v136_v7 = vmul.f32 %v122_v61, %v64_v54  ;;  %v158_v8 = vrot.slane %v157_v49, 1 }
  0xbf   :  { %v164_v9 = vadd.f32 %v163_v58, %v162_v51  ;;  %v150_v10 = vadd.f32 %v149_v59, %v148_v52  ;;  %v176_v13 = vadd.f32 %v175_v62, %v174_v55  ;;  %v145_v19 = vadd.f32 %v144_v57, %v143_v50 }
  0xc0   :  { %v169_v14 = vadd.f32 %v168_v63, %v167_v56  ;;  %v188_v17 = vsel %vm138_vm0, %v137_v6, 0.0  ;;  %v181_v18 = vsel %vm138_vm0, %v136_v7, 0.0  ;;  %v159_v26 = vadd.f32 %v158_v8, %v157_v49 }
  0xc1   :  { %v165_v20 = vrot.slane %v164_v9, 1  ;;  %v151_v21 = vrot.slane %v150_v10, 1  ;;  %v177_v22 = vrot.slane %v176_v13, 2  ;;  %v189_v24 = vrot.slane %v188_v17, 4 }
  0xc2   :  { %v170_v23 = vrot.slane %v169_v14, 2  ;;  %v182_v25 = vrot.slane %v181_v18, 4  ;;  %v195_v32 = vmul.f32 0.35355338, %v145_v19  ;;  %v197_v39 = vmul.f32 0.35355338, %v159_v26 }
  0xc3   :  { %v152_v27 = vadd.f32 %v151_v21, %v150_v10  ;;  %v178_v28 = vadd.f32 %v177_v22, %v176_v13  ;;  %v190_v30 = vadd.f32 %v189_v24, %v188_v17  ;;  %v166_v33 = vadd.f32 %v165_v20, %v164_v9 }
  0xc4   :  { %v171_v29 = vadd.f32 %v170_v23, %v169_v14  ;;  %v183_v31 = vadd.f32 %v182_v25, %v181_v18 }
  0xc5   :  { %v196_v34 = vmul.f32 0.35355338, %v152_v27  ;;  %v179_v35 = vrot.slane %v178_v28, 1  ;;  %v191_v37 = vrot.slane %v190_v30, 2  ;;  %v198_v45 = vmul.f32 0.35355338, %v166_v33 }
  0xc6   :  { %v172_v36 = vrot.slane %v171_v29, 1  ;;  %v184_v38 = vrot.slane %v183_v31, 2 }
  0xc7   :  { %v212_v40 = vsel %vm211_vm1, %v196_v34, %v195_v32  ;;  %v180_v41 = vadd.f32 %v179_v35, %v178_v28  ;;  %v192_v43 = vadd.f32 %v191_v37, %v190_v30 }
  0xc8   :  { %v173_v42 = vadd.f32 %v172_v36, %v171_v29  ;;  %v185_v44 = vadd.f32 %v184_v38, %v183_v31  ;;  %v214_v46 = vsel %vm213_vm2, %v197_v39, %v212_v40  ;;  %v67_v38 = vld [vmem:[#allocation7 + $0x8] sm:$0xff] }
  0xc9   :  { %v193_v48 = vrot.slane %v192_v43, 1  ;;  %v200_v50 = vmul.f32 0.35355338, %v180_v41  ;;  %v216_v51 = vsel %vm215_vm3, %v198_v45, %v214_v46 }
  0xca   :  { %v199_v47 = vmul.f32 0.35355338, %v173_v42  ;;  %v186_v49 = vrot.slane %v185_v44, 1 }
  0xcb   :  { %v194_v53 = vadd.f32 %v193_v48, %v192_v43 }
  0xcc   :  { %v187_v52 = vadd.f32 %v186_v49, %v185_v44  ;;  %v218_v54 = vsel %vm217_vm4, %v199_v47, %v216_v51 }
  0xcd   :  { %v202_v56 = vmul.f32 0.35355338, %v194_v53  ;;  %v220_v57 = vsel %vm219_vm5, %v200_v50, %v218_v54 }
  0xce   :  { %v201_v55 = vmul.f32 0.35355338, %v187_v52 }
  0xd0   :  { %v222_v58 = vsel %vm221_vm6, %v201_v55, %v220_v57 }
  0xd1   :  { %v224_v59 = vsel %vm223_vm7, %v202_v56, %v222_v58 }
  0xd2   :  { %v226_v60 = vsel %vm138_vm0, %v224_v59, -inf }
  0xd3   :  { %227 = vmax.xlane.f32.xlu0 %v226_v60 }
 0x160   :  { %v228_v61 = vpop.xlane.xlu0 %227 }
 0x161   :  { %v231_v62 = vrot.slane %v228_v61, 2  ;;  %v232_v63 = vrot.slane %v228_v61, 3  ;;  %v233_v6 = vrot.slane %v228_v61, 4  ;;  %v234_v7 = vrot.slane %v228_v61, 5 }
 0x162   :  { %v235_v8 = vrot.slane %v228_v61, 6  ;;  %v236_v9 = vrot.slane %v228_v61, 7  ;;  %v245_v10 = vsub.f32 %v195_v32, %v228_v61  ;;  %v230_v13 = vrot.slane %v228_v61, 1  ;;  %v66_v32 = vld [vmem:[#allocation7] sm:$0xff] }
 0x163   :  { %v247_v14 = vsub.f32 %v197_v39, %v231_v62  ;;  %v248_v17 = vsub.f32 %v198_v45, %v232_v63  ;;  %v249_v18 = vsub.f32 %v199_v47, %v233_v6  ;;  %v250_v19 = vsub.f32 %v200_v50, %v234_v7  ;;  %v69_v45 = vld [vmem:[#allocation7 + $0x18] sm:$0xff]  ;;  %v71_v62 = vld [vmem:[#allocation7 + $0x28] sm:$0xff]  ;;  %v68_v7 = vld [vmem:[#allocation7 + $0x10] sm:$0xff] }
 0x164   :  { %v253_v20 = vmul.f32 1.442695, %v245_v10  ;;  %v246_v21 = vsub.f32 %v196_v34, %v230_v13  ;;  %v251_v24 = vsub.f32 %v201_v55, %v235_v8  ;;  %v252_v26 = vsub.f32 %v202_v56, %v236_v9 }
 0x165   :  { %v257_v22 = vmul.f32 1.442695, %v247_v14  ;;  %v259_v23 = vmul.f32 1.442695, %v248_v17  ;;  %v261_v27 = vmul.f32 1.442695, %v249_v18 }
 0x166   :  { %593 = vpow2.f32 %v253_v20  ;;  %v255_v25 = vmul.f32 1.442695, %v246_v21  ;;  %v263_v28 = vmul.f32 1.442695, %v250_v19  ;;  %v265_v29 = vmul.f32 1.442695, %v251_v24 }
 0x167   :  { %595 = vpow2.f32 %v257_v22  ;;  %v267_v30 = vmul.f32 1.442695, %v252_v26  ;;  %v73_v20 = vld [vmem:[#allocation7 + $0x38] sm:$0xff]  ;;  %v70_v21 = vld [vmem:[#allocation7 + $0x20] sm:$0xff] }
 0x168   :  { %597 = vpow2.f32 %v259_v23 }
 0x169   :  { %599 = vpow2.f32 %v255_v25 }
 0x16a   :  { %601 = vpow2.f32 %v261_v27  ;;  %v72_v27 = vld [vmem:[#allocation7 + $0x30] sm:$0xff] }
 0x16b   :  { %603 = vpow2.f32 %v263_v28 }
 0x16c   :  { %605 = vpow2.f32 %v265_v29 }
 0x16d   :  { %607 = vpow2.f32 %v267_v30 }
 0x170   :  { %v594_v31 = vpop.eup %593 }
 0x171   :  { %v596_v33 = vpop.eup %595  ;;  %v299_v34 = vrot.slane %v594_v31, %v809_v3 }
 0x172   :  { %v598_v35 = vpop.eup %597  ;;  %v279_v39 = vrot.slane %v596_v33, 6  ;;  %v307_v61 = vrot.slane %v596_v33, %v809_v3 }
 0x173   :  { %v328_v36 = vmul.f32 %v299_v34, %v66_v32  ;;  %v600_v37 = vpop.eup %599  ;;  %v311_v40 = vrot.slane %v598_v35, %v809_v3  ;;  %v281_v50 = vrot.slane %v598_v35, 5  ;;  %v734_v32 = vmov 0  }
 0x174   :  { %v602_v41 = vpop.eup %601  ;;  %v303_v43 = vrot.slane %v600_v37, %v809_v3  ;;  %v277_v44 = vrot.slane %v600_v37, 7  ;;  %v330_v18 = vmul.f32 %v307_v61, %v68_v7  ;;  %592 = vset.pattern.permute.xlu0 %v734_v32  ;;  %591 = vset.pattern.permute.xlu1 %v734_v32 }
 0x175   :  { %v336_v42 = vsel %vm138_vm0, %v328_v36, 0.0  ;;  %v604_v46 = vpop.eup %603  ;;  %v283_v53 = vrot.slane %v602_v41, 4  ;;  %v331_v54 = vmul.f32 %v311_v40, %v69_v45  ;;  %v315_v19 = vrot.slane %v602_v41, %v809_v3 }
 0x176   :  { %337 = vadd.xlane.f32.xlu0 %v336_v42  ;;  %v606_v47 = vpop.eup %605  ;;  %v329_v48 = vmul.f32 %v303_v43, %v67_v38  ;;  %v278_v49 = vsel %vm211_vm1, %v277_v44, %v594_v31  ;;  %v285_v57 = vrot.slane %v604_v46, 3  ;;  %v319_v58 = vrot.slane %v604_v46, %v809_v3 }
 0x177   :  { %v608_v51 = vpop.eup %607  ;;  %v280_v52 = vsel %vm213_vm2, %v279_v39, %v278_v49  ;;  %v287_v60 = vrot.slane %v606_v47, 2  ;;  %v345_v10 = vsel %vm138_vm0, %v331_v54, 0.0  ;;  %v342_v24 = vsel %vm138_vm0, %v330_v18, 0.0 }
 0x178   :  { %v339_v55 = vsel %vm138_vm0, %v329_v48, 0.0  ;;  %v282_v56 = vsel %vm215_vm3, %v281_v50, %v280_v52  ;;  %v289_v6 = vrot.slane %v608_v51, 1  ;;  %v333_v13 = vmul.f32 %v319_v58, %v71_v62 }
 0x179   :  { %v284_v59 = vsel %vm217_vm4, %v283_v53, %v282_v56  ;;  %v327_v14 = vrot.slane %v608_v51, %v809_v3  ;;  %v332_v25 = vmul.f32 %v315_v19, %v70_v21  ;;  %v323_v26 = vrot.slane %v606_v47, %v809_v3 }
 0x17a   :  { %340 = vadd.xlane.f32.xlu0 %v339_v55  ;;  %v286_v63 = vsel %vm219_vm5, %v285_v57, %v284_v59  ;;  %v351_v22 = vsel %vm138_vm0, %v333_v13, 0.0  ;;  %v442_v57 = vand.u32 127, %v74_v0 }
 0x17b   :  { %v288_v8 = vsel %vm221_vm6, %v287_v60, %v286_v63  ;;  %v335_v23 = vmul.f32 %v327_v14, %v73_v20  ;;  %v348_v29 = vsel %vm138_vm0, %v332_v25, 0.0  ;;  %v334_v30 = vmul.f32 %v323_v26, %v72_v27 }
 0x17c   :  { %v290_v9 = vsel %vm223_vm7, %v289_v6, %v288_v8 }
 0x17d   :  { %v292_v17 = vsel %vm138_vm0, %v290_v9, 0.0  ;;  %v357_v28 = vsel %vm138_vm0, %v335_v23, 0.0  ;;  %v354_v31 = vsel %vm138_vm0, %v334_v30, 0.0 }
 0x17e   :  { %346 = vadd.xlane.f32.xlu0 %v345_v10  ;;  %293 = vadd.xlane.f32.xlu1 %v292_v17 }
 0x182   :  { %352 = vadd.xlane.f32.xlu0 %v351_v22  ;;  %343 = vadd.xlane.f32.xlu1 %v342_v24 }
 0x186   :  { %358 = vadd.xlane.f32.xlu0 %v357_v28  ;;  %349 = vadd.xlane.f32.xlu1 %v348_v29 }
 0x18a   :  { %355 = vadd.xlane.f32.xlu1 %v354_v31 }
 0x203   :  { %v338_v34 = vpop.xlane.xlu0 %337 }
 0x207   :  { %v341_v37 = vpop.xlane.xlu0 %340 }
 0x20b   :  { %v294_v33 = vpop.xlane.xlu1 %293  ;;  %v347_v45 = vpop.xlane.xlu0 %346 }
 0x20c   :  { %609 = vrcp.f32 %v294_v33 }
 0x20f   :  { %v344_v42 = vpop.xlane.xlu1 %343  ;;  %v353_v48 = vpop.xlane.xlu0 %352 }
 0x216   :  { %v610_v35 = vpop.eup %609 }
 0x217   :  { %v368_v36 = vrot.slane %v610_v35, %v83_v5  ;;  %v364_v38 = vrot.slane %v610_v35, %v809_v3  ;;  %v372_v40 = vrot.slane %v610_v35, %v90_v2  ;;  %v376_v43 = vrot.slane %v610_v35, %v97_v4  ;;  %v350_v3 = vpop.xlane.xlu1 %349 }
 0x218   :  { %v380_v5 = vrot.slane %v610_v35, %v104_v12  ;;  %v384_v47 = vrot.slane %v610_v35, %v111_v11  ;;  %v388_v50 = vrot.slane %v610_v35, %v118_v16  ;;  %v392_v51 = vrot.slane %v610_v35, %v125_v15  ;;  %v359_v12 = vpop.xlane.xlu0 %358 }
 0x219   :  { %v402_v39 = vmul.f32 %v368_v36, %v341_v37  ;;  %v401_v41 = vmul.f32 %v364_v38, %v338_v34  ;;  %v403_v44 = vmul.f32 %v372_v40, %v344_v42  ;;  %v404_v46 = vmul.f32 %v376_v43, %v347_v45 }
 0x21a   :  { %v405_v2 = vmul.f32 %v380_v5, %v350_v3  ;;  %v406_v49 = vmul.f32 %v384_v47, %v353_v48  ;;  %v408_v53 = vmul.f32 %v392_v51, %v359_v12  ;;  %v517_v54 = vmul.f32 %v610_v35, %v294_v33 }
 0x21b   :  { %421 = vperm.xlu0 %592, %v402_v39   ;;  %418 = vperm.xlu1 %591, %v401_v41   ;;  %v356_v4 = vpop.xlane.xlu1 %355  ;;  %v445_v16 = vsub.s32 %v442_v57, %v805_v1 }
 0x21c   :  { %v407_v52 = vmul.f32 %v388_v50, %v356_v4 }
 0x21f   :  { %424 = vperm.xlu1 %591, %v403_v44  }
 0x223   :  { %427 = vperm.xlu1 %591, %v404_v46  }
 0x227   :  { %430 = vperm.xlu1 %591, %v405_v2  }
 0x22b   :  { %433 = vperm.xlu1 %591, %v406_v49  }
 0x22f   :  { %436 = vperm.xlu1 %591, %v407_v52  }
 0x233   :  { %439 = vperm.xlu1 %591, %v408_v53  }
 0x239   :  { %518 = vxpose.xlu0.b32.start.end [1/1] (short) (narrow) %v517_v54, 8 }
 0x29a   :  { %v419_v11 = vpop.permute.xlu1 %418  ;;  %v422_v59 = vpop.permute.xlu0 %421 }
 0x29b   :  { %v450_v61 = vrot.slane %v422_v59, %v445_v16  ;;  %v446_v62 = vrot.slane %v419_v11, %v445_v16 }
 0x29d   :  { %v475_v8 = vsel %vm211_vm1, %v450_v61, %v446_v62 }
 0x29e   :  { %v425_v55 = vpop.permute.xlu1 %424 }
 0x29f   :  { %v454_v15 = vrot.slane %v425_v55, %v445_v16 }
 0x2a1   :  { %v476_v10 = vsel %vm213_vm2, %v454_v15, %v475_v8 }
 0x2a2   :  { %v428_v56 = vpop.permute.xlu1 %427 }
 0x2a3   :  { %v458_v63 = vrot.slane %v428_v56, %v445_v16 }
 0x2a5   :  { %v477_v14 = vsel %vm215_vm3, %v458_v63, %v476_v10 }
 0x2a6   :  { %v431_v58 = vpop.permute.xlu1 %430 }
 0x2a7   :  { %v462_v6 = vrot.slane %v431_v58, %v445_v16 }
 0x2a9   :  { %v478_v0 = vsel %vm217_vm4, %v462_v6, %v477_v14 }
 0x2aa   :  { %v434_v60 = vpop.permute.xlu1 %433 }
 0x2ab   :  { %v466_v9 = vrot.slane %v434_v60, %v445_v16 }
 0x2ad   :  { %v479_v1 = vsel %vm219_vm5, %v466_v9, %v478_v0 }
 0x2ae   :  { %v437_v7 = vpop.permute.xlu1 %436 }
 0x2af   :  { %v470_v13 = vrot.slane %v437_v7, %v445_v16 }
 0x2b1   :  { %v480_v19 = vsel %vm221_vm6, %v470_v13, %v479_v1 }
 0x2b2   :  { %v440_v17 = vpop.permute.xlu1 %439 }
 0x2b3   :  { %v474_v18 = vrot.slane %v440_v17, %v445_v16 }
 0x2b5   :  { %v481_v20 = vsel %vm223_vm7, %v474_v18, %v480_v19 }
 0x2b6   :  { %483 = vxpose.xlu1.b32.start.end [1/1] (short) (narrow) %v481_v20, 8 }
 0x2b9   :  { %v534_v21 = vpop.trf.xlu0 }
 0x2ba   :  { %551 = vst.msk [vmem:[#allocation9] sm:$0x1] %vm550_vm8, %v534_v21 }
 0x2bb   :  { %688 = shalt.err (!%p685_p0)
}
 0x2bc   :  { %s689_s30 = scalar_lea.hbm %s924_s4, 16 }
 0x2bd   :  { %p690_p1 = scmp.ne.s32.totalorder %s924_s4, %s689_s30  ;;  %p693_p2 = scmp.lt.u32.totalorder %s689_s30, %s924_s4 }
 0x2bf   :  { %p695_p3 = pnand %p693_p2, %p690_p1 }
 0x2c1   :  { %698 = shalt.err (!%p695_p3)
}
 0x2c2   :  { %571 = dma.vmem_to_hbm [thread:$0]  %s569_s25, 16, %s924_s4, [#allocation10]   ;;  %vm515_vm9 = vcmask 64512  }
 0x2c3   :  { %s736_s11 = smov [#allocation8]  }
 0x2c4   :  { %s558_s12 = sshll.u32 %s736_s11, 4  ;;  %s559_s12 = int_to_ptr.vmem [resolvable:$true] %s558_s12 }
 0x2c5   :  { %s699_s13 = scalar_lea.vmem %s559_s12, 128  ;;  %p704_p5 = scmp.lt.s32.totalorder %s559_s12, %s559_s12 }
 0x2c6   :  { %p700_p4 = scmp.ne.s32.totalorder %s559_s12, %s699_s13  ;;  %p705_p6 = scmp.lt.s32.totalorder %s699_s13, %s699_s13 }
 0x2c8   :  { %p706_p7 = por %p705_p6, %p704_p5 }
 0x2ca   :  { %p707_p8 = pnand %p706_p7, %p700_p4 }
 0x336   :  { %v499_v22 = vpop.trf.xlu1 }
 0x337   :  { %516 = vst.msk [vmem:[#allocation8] sm:$0xff] %vm515_vm9, %v499_v22 }
 0x338   :  { %710 = shalt.err (!%p707_p8)
}
 0x339   :  { %s711_s15 = scalar_lea.hbm %s923_s3, 128 }
 0x33a   :  { %p712_p9 = scmp.ne.s32.totalorder %s923_s3, %s711_s15  ;;  %p715_p10 = scmp.lt.u32.totalorder %s711_s15, %s923_s3 }
 0x33c   :  { %p717_p11 = pnand %p715_p10, %p712_p9 }
 0x33e   :  { %720 = shalt.err (!%p717_p11)
}
 0x33f   :  { %561 = dma.vmem_to_hbm [thread:$0]  %s559_s12, 128, %s923_s3, [#allocation4]  }
 0x340   :  { %725 = dma.done.wait [#allocation4], 128  }
 0x341   :  { %726 = vsyncadd [#allocation4], 4294967168 }
 0x342   :  { %727 = dma.done.wait [#allocation10], 16  }
 0x343   :  { %728 = vsyncadd [#allocation10], 4294967280 }
 0x344   :  { %578 = vsyncpa [#allocation3], 1 }
 0x345   :  { %579 = vsyncpa [#allocation6], 1 }
 0x346   :  { %580 = vsyncpa [#allocation4], 1 }
 0x347   :  { %581 = vsyncpa [#allocation10], 1 }

</bundles_post_ra>
